<compile_context>
chip_gen: v7x
topology: tpu7x:2x2x1
jax: 0.10.0
libtpu: 0.0.40
codegen_flags: <defaults>
</compile_context>

<pallas_src>
from functools import partial

import numpy as np
import jax
import jax.numpy as jnp
from jax.experimental import pallas as pl
from jax.experimental.pallas import tpu as pltpu


# --------------------------------------------------------------------------- #
# Streaming MSE-partials kernel
# --------------------------------------------------------------------------- #
def _fold_squared(diff):
    """Fold a (tn, tf) f32 tile of differences into an (8, 128) tile of partial sums
    of diff**2 using only lane/sublane-aligned static slices and VPU adds."""
    tn, tf = diff.shape
    acc = None
    if tf % 128 == 0:
        for c in range(tf // 128):
            blk = diff[:, c * 128:(c + 1) * 128]
            blk = blk * blk
            acc = blk if acc is None else acc + blk            # (tn, 128)
    if acc is not None and tn % 8 == 0:
        out = None
        for r in range(tn // 8):
            rb = acc[r * 8:(r + 1) * 8, :]
            out = rb if out is None else out + rb              # (8, 128)
        return out
    # Degenerate tiny/ragged full-dim tiles (tn < 8 or tf not a multiple of 128):
    # reduce to a scalar once and place it at position (0, 0) of the partial tile.
    s = jnp.sum(acc) if acc is not None else jnp.sum(diff * diff)
    rid = jax.lax.broadcasted_iota(jnp.int32, (8, 128), 0)
    cid = jax.lax.broadcasted_iota(jnp.int32, (8, 128), 1)
    return jnp.where((rid == 0) & (cid == 0), s, jnp.float32(0.0))


def _mse_partial_kernel(x_ref, ax_ref, out_ref, *, n_rows, n_cols,
                        row_ragged, col_ragged):
    i = pl.program_id(0)
    j = pl.program_id(1)
    tn, tf = x_ref.shape

    @pl.when(j == 0)
    def _init():
        out_ref[...] = jnp.zeros_like(out_ref)

    def _accumulate(apply_mask):
        diff = x_ref[...].astype(jnp.float32) - ax_ref[...].astype(jnp.float32)
        if apply_mask:
            rows_ok = (jax.lax.broadcasted_iota(jnp.int32, (tn, 1), 0) + i * tn) < n_rows
            cols_ok = (jax.lax.broadcasted_iota(jnp.int32, (1, tf), 1) + j * tf) < n_cols
            # Mask BEFORE squaring so OOB block padding never becomes inf/NaN.
            diff = jnp.where(rows_ok & cols_ok, diff, jnp.float32(0.0))
        out_ref[...] += _fold_squared(diff)

    conds = []
    if row_ragged:
        conds.append(i == pl.num_programs(0) - 1)
    if col_ragged:
        conds.append(j == pl.num_programs(1) - 1)

    if conds:
        is_edge = conds[0] if len(conds) == 1 else (conds[0] | conds[1])

        @pl.when(jnp.logical_not(is_edge))
        def _interior():
            _accumulate(False)

        @pl.when(is_edge)
        def _edge():
            _accumulate(True)
    else:
        _accumulate(False)


# --------------------------------------------------------------------------- #
# Tiny clustering-term kernel (single step, fully VMEM resident)
# --------------------------------------------------------------------------- #
def _cluster_kernel(alpha_ref, h_ref, c_ref, cn_ref, out_ref):
    alpha = alpha_ref[0]
    h = h_ref[...].astype(jnp.float32)               # (N, D)
    c = c_ref[...].astype(jnp.float32)               # (K, D)
    cn = cn_ref[...]                                 # (1, K)  precomputed ||c||^2
    hh = jnp.sum(h * h, axis=1, keepdims=True)       # (N, 1)
    hc = jax.lax.dot_general(h, c, (((1,), (1,)), ((), ())),
                             preferred_element_type=jnp.float32)   # (N, K)
    dist = jnp.sqrt(jnp.maximum(hh + cn - 2.0 * hc, 0.0))
    num = jnp.exp(-alpha * dist)
    den = jnp.sum(num, axis=1, keepdims=True) + 1e-8
    # sum(dist * soft) per row == sum(dist * num) / den ; exact divide (torch semantics).
    wsum = jnp.sum(dist * num, axis=1, keepdims=True) / den
    out_ref[0] = jnp.sum(wsum) / jnp.float32(h_ref.shape[0])


# --------------------------------------------------------------------------- #
# Tile / VMEM budgeting
# --------------------------------------------------------------------------- #
def _chip_budgets():
    """(per-input tile byte budget, vmem_limit_bytes) from the chip's VMEM capacity."""
    try:
        cap = int(getattr(pltpu.get_tpu_info(), "vmem_capacity_bytes", 0))
    except Exception:
        cap = 0
    if cap >= (100 << 20):            # v5e / v6e class: 128 MiB physical VMEM
        return 8 << 20, 96 << 20
    # v7x class (64 MiB physical) or unknown: conservative sizing
    return 4 << 20, 48 << 20


def _choose_tiles(n, f, itemsize, per_input_bytes):
    """Pick (tn, tf): prefer the full feature width when it is 128-aligned or small,
    otherwise the biggest multiple of 128 within budget; then grow rows in multiples
    of 8.  Tile dims are always multiples of (8, 128) unless they equal full dims."""
    itemsize = max(int(itemsize), 4)   # in-kernel temps are f32; size for worst case
    # Feature (lane) tile.
    if (f <= 128 or f % 128 == 0) and f * itemsize * 8 <= per_input_bytes:
        tf = f
    elif f >= 128:
        max_tf = max(128, (per_input_bytes // (8 * itemsize)) // 128 * 128)
        tf = min(max_tf, (f // 128) * 128)
    else:
        tf = f
    # Row (sublane) tile.
    if n <= 8:
        tn = n
    else:
        strip_bytes = 8 * tf * itemsize
        n_strips = max(1, per_input_bytes // strip_bytes)
        tn = min(n if n % 8 == 0 else (n // 8) * 8, int(n_strips) * 8)
        tn = max(8, (tn // 8) * 8)
    return tn, tf


# --------------------------------------------------------------------------- #
# Public wrapper
# --------------------------------------------------------------------------- #
def dkn_loss(x, h_x, a_x, cluster_centers, alpha=1.0, lambda_cl=1.0):
    """Returns (total_loss, loss_reconstr, loss_clustering) as float32 scalars."""
    n = x.shape[0]
    xf = x.reshape(n, -1)              # keep original dtype; upcast in-kernel
    af = a_x.reshape(n, -1)
    f = xf.shape[1]
    n_lat, d = h_x.shape
    k = cluster_centers.shape[0]

    per_input_bytes, vmem_limit = _chip_budgets()
    tn, tf = _choose_tiles(n, f, max(xf.dtype.itemsize, af.dtype.itemsize),
                           per_input_bytes)
    gi = pl.cdiv(n, tn)
    gj = pl.cdiv(f, tf)
    row_ragged = (n % tn) != 0
    col_ragged = (f % tf) != 0

    mse_kernel = partial(_mse_partial_kernel, n_rows=n, n_cols=f,
                         row_ragged=row_ragged, col_ragged=col_ragged)

    partials = pl.pallas_call(
        mse_kernel,
        grid=(gi, gj),
        out_shape=jax.ShapeDtypeStruct((gi * 8, 128), jnp.float32),
        in_specs=[
            pl.BlockSpec((tn, tf), lambda i, j: (i, j)),        # x tiles
            pl.BlockSpec((tn, tf), lambda i, j: (i, j)),        # a_x tiles
        ],
        # Per-row-tile partial-sum block; constant over j => VMEM-resident accumulator.
        out_specs=pl.BlockSpec((8, 128), lambda i, j: (i, 0)),
        compiler_params=pltpu.CompilerParams(
            dimension_semantics=("parallel", "arbitrary"),
            vmem_limit_bytes=vmem_limit),
        cost_estimate=pl.CostEstimate(
            flops=3 * n * f,
            transcendentals=0,
            bytes_accessed=n * f * (xf.dtype.itemsize + af.dtype.itemsize)
                           + gi * 8 * 128 * 4),
    )(xf, af)
    loss_rec = jnp.sum(partials) / jnp.float32(n * f)

    # Tiny precompute: center squared norms, shape (1, K).
    c_norms = jnp.sum(cluster_centers.astype(jnp.float32) ** 2, axis=1)[None, :]
    alpha_arr = jnp.asarray([alpha], dtype=jnp.float32)       # SMEM scalar

    loss_cl = pl.pallas_call(
        _cluster_kernel,
        grid=(1,),
        out_shape=jax.ShapeDtypeStruct((1,), jnp.float32),
        in_specs=[
            pl.BlockSpec(memory_space=pltpu.MemorySpace.SMEM),  # alpha
            pl.BlockSpec((n_lat, d), lambda i: (0, 0)),         # h_x (resident)
            pl.BlockSpec((k, d), lambda i: (0, 0)),             # centers (resident)
            pl.BlockSpec((1, k), lambda i: (0, 0)),             # ||c||^2 (resident)
        ],
        out_specs=pl.BlockSpec(memory_space=pltpu.MemorySpace.SMEM),
        compiler_params=pltpu.CompilerParams(
            dimension_semantics=("arbitrary",)),
        cost_estimate=pl.CostEstimate(
            flops=2 * n_lat * k * d + 8 * n_lat * k,
            transcendentals=n_lat * k,
            bytes_accessed=(n_lat * d + k * d + k + n_lat) * 4),
    )(alpha_arr, h_x, cluster_centers, c_norms)[0]

    total = loss_rec + lambda_cl * loss_cl
    return total, loss_rec, loss_cl


# --------------------------------------------------------------------------- #
# Reference + checks
# --------------------------------------------------------------------------- #
def dkn_loss_ref(x, h_x, a_x, cluster_centers, alpha=1.0, lambda_cl=1.0):
    """Pure-JAX reference mirroring the PyTorch module."""
    loss_rec = jnp.mean((x.astype(jnp.float32) - a_x.astype(jnp.float32)) ** 2)
    diff = (h_x.astype(jnp.float32)[:, None, :]
            - cluster_centers.astype(jnp.float32)[None, :, :])
    dist = jnp.sqrt(jnp.maximum(jnp.sum(diff * diff, axis=-1), 0.0))
    num = jnp.exp(-alpha * dist)
    den = jnp.sum(num, axis=1, keepdims=True) + 1e-8
    soft = num / den
    loss_cl = jnp.mean(jnp.sum(dist * soft, axis=1))
    return loss_rec + lambda_cl * loss_cl, loss_rec, loss_cl


def _check(x, h_x, a_x, centers, alpha, lam):
    got = dkn_loss(x, h_x, a_x, centers, alpha=alpha, lambda_cl=lam)
    jax.block_until_ready(got)
    ref = dkn_loss_ref(x, h_x, a_x, centers, alpha, lam)
    for g, r in zip(got, ref):
        assert np.allclose(np.asarray(g), np.asarray(r), rtol=2e-3, atol=1e-5), (g, r)


if __name__ == "__main__":
    key = jax.random.PRNGKey(0)

    # --- case 1: shapes implied by the module (aligned single-tile fast path) ---
    kx, ka, kh, kc, key = jax.random.split(key, 5)
    B, C, H, W = 8, 4, 16, 16
    D, K = 32, 4
    x = jax.random.normal(kx, (B, C, H, W), dtype=jnp.float32)
    a_x = x + 0.1 * jax.random.normal(ka, (B, C, H, W), dtype=jnp.float32)
    h_x = jax.random.normal(kh, (B, D), dtype=jnp.float32)
    centers = jax.random.normal(kc, (K, D), dtype=jnp.float32)
    _check(x, h_x, a_x, centers, alpha=1.0, lam=1.0)

    # --- case 1b: bf16 reconstruction stream (kernel upcasts in place) ---
    _check(x.astype(jnp.bfloat16), h_x, a_x.astype(jnp.bfloat16), centers,
           alpha=1.0, lam=1.0)

    # --- case 2: ragged rows and columns (exercises the edge-masked path) ---
    kx, ka, kh, kc, key = jax.random.split(key, 5)
    B2, C2, H2, W2 = 12, 3, 20, 20        # F = 1200 (not /128), B = 12 (not /8)
    D2, K2 = 32, 5
    x2 = jax.random.normal(kx, (B2, C2, H2, W2), dtype=jnp.float32)
    a_x2 = x2 + 0.1 * jax.random.normal(ka, (B2, C2, H2, W2), dtype=jnp.float32)
    h_x2 = jax.random.normal(kh, (B2, D2), dtype=jnp.float32)
    centers2 = jax.random.normal(kc, (K2, D2), dtype=jnp.float32)
    _check(x2, h_x2, a_x2, centers2, alpha=0.5, lam=2.0)

    # --- case 3: tiny degenerate shapes (full-dim blocks, scalar-fold fallback) ---
    kx, ka, kh, kc, key = jax.random.split(key, 5)
    B3, C3, H3, W3 = 4, 1, 5, 20          # F = 100 < 128, B = 4 < 8
    D3, K3 = 16, 3
    x3 = jax.random.normal(kx, (B3, C3, H3, W3), dtype=jnp.float32)
    a_x3 = x3 + 0.1 * jax.random.normal(ka, (B3, C3, H3, W3), dtype=jnp.float32)
    h_x3 = jax.random.normal(kh, (B3, D3), dtype=jnp.float32)
    centers3 = jax.random.normal(kc, (K3, D3), dtype=jnp.float32)
    _check(x3, h_x3, a_x3, centers3, alpha=1.5, lam=0.7)

    print("KERNEL_OK")
</pallas_src>

<mosaic_0001>
module attributes {stable_mosaic.version = 11 : i64} {
  func.func @_mse_partial_kernel(%arg0: i32, %arg1: i32, %arg2: memref<8x1024xf32, #tpu.memory_space<vmem>>, %arg3: memref<8x1024xf32, #tpu.memory_space<vmem>>, %arg4: memref<8x128xf32, #tpu.memory_space<vmem>>) attributes {dimension_semantics = [#tpu.dimension_semantics<parallel>, #tpu.dimension_semantics<arbitrary>], iteration_bounds = array<i64: 1, 1>, scalar_prefetch = 0 : i64, scratch_operands = 0 : i64, tpu.core_type = #tpu.core_type<tc>, window_params = [{transform_indices = @transform_0, window_bounds = array<i64: 8, 1024>}, {transform_indices = @transform_1, window_bounds = array<i64: 8, 1024>}, {transform_indices = @transform_2, window_bounds = array<i64: 8, 128>}]} {
    %c0_i32 = arith.constant 0 : i32
    %0 = arith.cmpi eq, %arg1, %c0_i32 : i32
    %1 = arith.extui %0 : i1 to i32
    %c0_i32_0 = arith.constant 0 : i32
    %2 = arith.cmpi ne, %1, %c0_i32_0 : i32
    scf.if %2 {
      %cst = arith.constant 0.000000e+00 : f32
      %32 = vector.broadcast %cst : f32 to vector<8x128xf32>
      %c0_8 = arith.constant 0 : index
      %c0_9 = arith.constant 0 : index
      %33 = vector.load %arg4[%c0_8, %c0_9] : memref<8x128xf32, #tpu.memory_space<vmem>>, vector<8x128xf32>
      tpu.vector_store %arg4[%c0_8, %c0_9], %32 {strides = array<i32>} : memref<8x128xf32, #tpu.memory_space<vmem>>, vector<8x128xf32>,
    } else {
    }
    %c0 = arith.constant 0 : index
    %c0_1 = arith.constant 0 : index
    %3 = vector.load %arg2[%c0, %c0_1] : memref<8x1024xf32, #tpu.memory_space<vmem>>, vector<8x1024xf32>
    %c0_2 = arith.constant 0 : index
    %c0_3 = arith.constant 0 : index
    %4 = vector.load %arg3[%c0_2, %c0_3] : memref<8x1024xf32, #tpu.memory_space<vmem>>, vector<8x1024xf32>
    %5 = arith.subf %3, %4 : vector<8x1024xf32>
    %c0_4 = arith.constant 0 : index
    %c0_5 = arith.constant 0 : index
    %6 = vector.load %arg4[%c0_4, %c0_5] : memref<8x128xf32, #tpu.memory_space<vmem>>, vector<8x128xf32>
    %7 = vector.extract_strided_slice %5 {offsets = [0, 0], sizes = [8, 128], strides = [1, 1]} : vector<8x1024xf32> to vector<8x128xf32>
    %8 = arith.mulf %7, %7 : vector<8x128xf32>
    %9 = vector.extract_strided_slice %5 {offsets = [0, 128], sizes = [8, 128], strides = [1, 1]} : vector<8x1024xf32> to vector<8x128xf32>
    %10 = arith.mulf %9, %9 : vector<8x128xf32>
    %11 = arith.addf %8, %10 : vector<8x128xf32>
    %12 = vector.extract_strided_slice %5 {offsets = [0, 256], sizes = [8, 128], strides = [1, 1]} : vector<8x1024xf32> to vector<8x128xf32>
    %13 = arith.mulf %12, %12 : vector<8x128xf32>
    %14 = arith.addf %11, %13 : vector<8x128xf32>
    %15 = vector.extract_strided_slice %5 {offsets = [0, 384], sizes = [8, 128], strides = [1, 1]} : vector<8x1024xf32> to vector<8x128xf32>
    %16 = arith.mulf %15, %15 : vector<8x128xf32>
    %17 = arith.addf %14, %16 : vector<8x128xf32>
    %18 = vector.extract_strided_slice %5 {offsets = [0, 512], sizes = [8, 128], strides = [1, 1]} : vector<8x1024xf32> to vector<8x128xf32>
    %19 = arith.mulf %18, %18 : vector<8x128xf32>
    %20 = arith.addf %17, %19 : vector<8x128xf32>
    %21 = vector.extract_strided_slice %5 {offsets = [0, 640], sizes = [8, 128], strides = [1, 1]} : vector<8x1024xf32> to vector<8x128xf32>
    %22 = arith.mulf %21, %21 : vector<8x128xf32>
    %23 = arith.addf %20, %22 : vector<8x128xf32>
    %24 = vector.extract_strided_slice %5 {offsets = [0, 768], sizes = [8, 128], strides = [1, 1]} : vector<8x1024xf32> to vector<8x128xf32>
    %25 = arith.mulf %24, %24 : vector<8x128xf32>
    %26 = arith.addf %23, %25 : vector<8x128xf32>
    %27 = vector.extract_strided_slice %5 {offsets = [0, 896], sizes = [8, 128], strides = [1, 1]} : vector<8x1024xf32> to vector<8x128xf32>
    %28 = arith.mulf %27, %27 : vector<8x128xf32>
    %29 = arith.addf %26, %28 : vector<8x128xf32>
    %30 = arith.addf %6, %29 : vector<8x128xf32>
    %c0_6 = arith.constant 0 : index
    %c0_7 = arith.constant 0 : index
    %31 = vector.load %arg4[%c0_6, %c0_7] : memref<8x128xf32, #tpu.memory_space<vmem>>, vector<8x128xf32>
    tpu.vector_store %arg4[%c0_6, %c0_7], %30 {strides = array<i32>} : memref<8x128xf32, #tpu.memory_space<vmem>>, vector<8x128xf32>,
    return
  }
  func.func @transform_0(%arg0: i32, %arg1: i32) -> (i32, i32) {
    %c0_i32 = arith.constant 0 : i32
    return %arg0, %arg1 : i32, i32
  }
  func.func @transform_1(%arg0: i32, %arg1: i32) -> (i32, i32) {
    %c0_i32 = arith.constant 0 : i32
    return %arg0, %arg1 : i32, i32
  }
  func.func @transform_2(%arg0: i32, %arg1: i32) -> (i32, i32) {
    %c0_i32 = arith.constant 0 : i32
    %c0_i32_0 = arith.constant 0 : i32
    return %arg0, %c0_i32 : i32, i32
  }
}

</mosaic_0001>

<bundles_post_ra>
// kernel: tpu_custom_call.1
= control target key start
LH: loop header
LB: loop body
LE: loop exit
PB: predicated region body
PF: predicated region fallthrough
CT: control target
= control target key end

     0   :  { %7 = vsyncpa [#allocation3], 0  ;;  %s229_s0 = inlined_call_operand.hbm [shape: f32[8,1024], index: 0, kind: input, shape index: {}]   ;;  %s230_s1 = inlined_call_operand.hbm [shape: f32[8,1024], index: 1, kind: input, shape index: {}]   ;;  %s231_s2 = inlined_call_operand.hbm [shape: f32[8,128], index: 2, kind: output, shape index: {}]  }
   0x1   :  { %8 = vsyncpa [#allocation6], 0 }
   0x2   :  { %9 = vsyncpa [#allocation4], 0  ;;  %s175_s9 = smov [#allocation2]   ;;  %s176_s11 = smov [#allocation5]  }
   0x3   :  { %s16_s10 = sshll.u32 %s175_s9, 4  ;;  %s26_s12 = sshll.u32 %s176_s11, 4  ;;  %s17_s10 = int_to_ptr.vmem [resolvable:$true] %s16_s10  ;;  %s27_s12 = int_to_ptr.vmem [resolvable:$true] %s26_s12 }
   0x4   :  { %s103_s15 = scalar_lea.hbm %s229_s0, 1024 }
   0x5   :  { %p104_p0 = scmp.ne.s32.totalorder %s229_s0, %s103_s15  ;;  %p107_p1 = scmp.lt.u32.totalorder %s103_s15, %s229_s0 }
   0x7   :  { %p109_p2 = pnand %p107_p1, %p104_p0 }
   0x9   :  { %112 = shalt.err (!%p109_p2)
}
   0xa   :  { %s113_s20 = scalar_lea.vmem %s17_s10, 1024  ;;  %p118_p4 = scmp.lt.s32.totalorder %s17_s10, %s17_s10 }
   0xb   :  { %p114_p3 = scmp.ne.s32.totalorder %s17_s10, %s113_s20  ;;  %p119_p5 = scmp.lt.s32.totalorder %s113_s20, %s113_s20 }
   0xd   :  { %p120_p6 = por %p119_p5, %p118_p4 }
   0xf   :  { %p121_p7 = pnand %p120_p6, %p114_p3 }
  0x11   :  { %124 = shalt.err (!%p121_p7)
}
  0x12   :  { %19 = dma.hbm_to_vmem [thread:$0]  %s229_s0, 1024, %s17_s10, [#allocation3]  }
  0x13   :  { %s125_s25 = scalar_lea.hbm %s230_s1, 1024 }
  0x14   :  { %p126_p8 = scmp.ne.s32.totalorder %s230_s1, %s125_s25  ;;  %p129_p9 = scmp.lt.u32.totalorder %s125_s25, %s230_s1 }
  0x16   :  { %p131_p10 = pnand %p129_p9, %p126_p8 }
  0x18   :  { %134 = shalt.err (!%p131_p10)
}
  0x19   :  { %s135_s30 = scalar_lea.vmem %s27_s12, 1024  ;;  %p140_p12 = scmp.lt.s32.totalorder %s27_s12, %s27_s12 }
  0x1a   :  { %p136_p11 = scmp.ne.s32.totalorder %s27_s12, %s135_s30  ;;  %p141_p13 = scmp.lt.s32.totalorder %s135_s30, %s135_s30 }
  0x1c   :  { %p142_p0 = por %p141_p13, %p140_p12 }
  0x1e   :  { %p143_p1 = pnand %p142_p0, %p136_p11 }
  0x20   :  { %146 = shalt.err (!%p143_p1)
}
  0x21   :  { %29 = dma.hbm_to_vmem [thread:$0]  %s230_s1, 1024, %s27_s12, [#allocation6]  }
  0x22   :  { %169 = dma.done.wait [#allocation3], 1024  }
  0x23   :  { %170 = vsyncadd [#allocation3], 4294966272 }
  0x24   :  { %171 = dma.done.wait [#allocation6], 1024  }
  0x25   :  { %172 = vsyncadd [#allocation6], 4294966272  ;;  %v41_v0 = vld [vmem:[#allocation2] sm:$0xff]  ;;  %v42_v1 = vld [vmem:[#allocation2 + $0x8] sm:$0xff]  ;;  %s177_s1 = smov [#allocation7]  }
  0x26   :  { %v43_v2 = vld [vmem:[#allocation2 + $0x10] sm:$0xff]  ;;  %v44_v3 = vld [vmem:[#allocation2 + $0x18] sm:$0xff]  ;;  %v45_v4 = vld [vmem:[#allocation2 + $0x20] sm:$0xff]  ;;  %s89_s4 = sshll.u32 %s177_s1, 4  ;;  %s90_s4 = int_to_ptr.vmem [resolvable:$true] %s89_s4 }
  0x27   :  { %v49_v5 = vld [vmem:[#allocation5] sm:$0xff]  ;;  %v50_v6 = vld [vmem:[#allocation5 + $0x8] sm:$0xff]  ;;  %v51_v7 = vld [vmem:[#allocation5 + $0x10] sm:$0xff]  ;;  %s147_s5 = scalar_lea.vmem %s90_s4, 128  ;;  %p152_p3 = scmp.lt.s32.totalorder %s90_s4, %s90_s4 }
  0x28   :  { %v52_v8 = vld [vmem:[#allocation5 + $0x18] sm:$0xff]  ;;  %v57_v9 = vsub.f32 %v41_v0, %v49_v5  ;;  %v53_v10 = vld [vmem:[#allocation5 + $0x20] sm:$0xff]  ;;  %v58_v11 = vsub.f32 %v42_v1, %v50_v6  ;;  %v59_v12 = vsub.f32 %v43_v2, %v51_v7  ;;  %v46_v14 = vld [vmem:[#allocation2 + $0x28] sm:$0xff]  ;;  %p148_p2 = scmp.ne.s32.totalorder %s90_s4, %s147_s5  ;;  %p153_p4 = scmp.lt.s32.totalorder %s147_s5, %s147_s5 }
  0x29   :  { %v60_v13 = vsub.f32 %v44_v3, %v52_v8  ;;  %v54_v15 = vld [vmem:[#allocation5 + $0x28] sm:$0xff]  ;;  %v61_v17 = vsub.f32 %v45_v4, %v53_v10  ;;  %v47_v20 = vld [vmem:[#allocation2 + $0x30] sm:$0xff]  ;;  %v48_v25 = vld [vmem:[#allocation2 + $0x38] sm:$0xff] }
  0x2a   :  { %v66_v16 = vmul.f32 %v57_v9, %v57_v9  ;;  %v67_v18 = vmul.f32 %v58_v11, %v58_v11  ;;  %v69_v19 = vmul.f32 %v59_v12, %v59_v12  ;;  %v55_v21 = vld [vmem:[#allocation5 + $0x30] sm:$0xff]  ;;  %v62_v22 = vsub.f32 %v46_v14, %v54_v15  ;;  %v56_v26 = vld [vmem:[#allocation5 + $0x38] sm:$0xff]  ;;  %p154_p5 = por %p153_p4, %p152_p3 }
  0x2b   :  { %v71_v24 = vmul.f32 %v60_v13, %v60_v13  ;;  %v63_v27 = vsub.f32 %v47_v20, %v55_v21  ;;  %v73_v29 = vmul.f32 %v61_v17, %v61_v17  ;;  %v64_v30 = vsub.f32 %v48_v25, %v56_v26 }
  0x2c   :  { %v68_v23 = vadd.f32 %v67_v18, %v66_v16  ;;  %v75_v32 = vmul.f32 %v62_v22, %v62_v22  ;;  %p155_p6 = pnand %p154_p5, %p148_p2 }
  0x2d   :  { %v77_v34 = vmul.f32 %v63_v27, %v63_v27  ;;  %v79_v36 = vmul.f32 %v64_v30, %v64_v30 }
  0x2e   :  { %v70_v28 = vadd.f32 %v69_v19, %v68_v23 }
  0x30   :  { %v72_v31 = vadd.f32 %v71_v24, %v70_v28 }
  0x32   :  { %v74_v33 = vadd.f32 %v73_v29, %v72_v31 }
  0x34   :  { %v76_v35 = vadd.f32 %v75_v32, %v74_v33 }
  0x36   :  { %v78_v37 = vadd.f32 %v77_v34, %v76_v35 }
  0x38   :  { %v80_v38 = vadd.f32 %v79_v36, %v78_v37 }
  0x3a   :  { %82 = vst [vmem:[#allocation7] sm:$0xff] %v80_v38 }
  0x3b   :  { %158 = shalt.err (!%p155_p6)
}
  0x3c   :  { %s159_s8 = scalar_lea.hbm %s231_s2, 128 }
  0x3d   :  { %p160_p7 = scmp.ne.s32.totalorder %s231_s2, %s159_s8  ;;  %p163_p8 = scmp.lt.u32.totalorder %s159_s8, %s231_s2 }
  0x3f   :  { %p165_p9 = pnand %p163_p8, %p160_p7 }
  0x41   :  { %168 = shalt.err (!%p165_p9)
}
  0x42   :  { %92 = dma.vmem_to_hbm [thread:$0]  %s90_s4, 128, %s231_s2, [#allocation4]  }
  0x43   :  { %173 = dma.done.wait [#allocation4], 128  }
  0x44   :  { %174 = vsyncadd [#allocation4], 4294967168 }
  0x45   :  { %96 = vsyncpa [#allocation3], 1 }
  0x46   :  { %97 = vsyncpa [#allocation6], 1 }
  0x47   :  { %98 = vsyncpa [#allocation4], 1 }

</bundles_post_ra>
